<compile_context>
chip_gen: v7x
topology: tpu7x:2x2x1
jax: 0.10.0
libtpu: 0.0.40
codegen_flags: <defaults>
</compile_context>

<pallas_src>
import math

import jax
import jax.numpy as jnp
from jax.experimental import pallas as pl
from jax.experimental.pallas import tpu as pltpu

LANE = 128      # f32 lane width
TILE_B = 8      # batch tile (multiple of the f32 sublane count)


def _round_up(x, m):
    return ((x + m - 1) // m) * m


# ----------------------------- fused kernel ---------------------------------

def _make_fused_mlp_kernel(num_layers, out_dim):
    """Builds a kernel: x_ref, w0,b0,...,w{L-1},b{L-1}, logits_ref, logp_ref."""

    def kernel(x_ref, *refs):
        wb_refs = refs[: 2 * num_layers]
        logits_ref, logp_ref = refs[2 * num_layers:]

        h = x_ref[...]                                  # (TILE_B, in_pad) f32
        for l in range(num_layers):                     # unrolled at trace time
            w = wb_refs[2 * l][...]                     # (k_pad, n_pad)
            b = wb_refs[2 * l + 1][...]                 # (1,  n_pad)
            y = jnp.dot(h, w, preferred_element_type=jnp.float32) + b
            h = jnp.maximum(y, 0.0)                     # ReLU after every Linear

        # padded lanes of h are exactly 0 (zero-padded weights & biases); they
        # are harmless for 'logits' (sliced off outside) but MUST be excluded
        # from the softmax normalizer.
        logits_ref[...] = h

        lane_ids = jax.lax.broadcasted_iota(jnp.int32, h.shape, dimension=1)
        valid = lane_ids < out_dim
        masked = jnp.where(valid, h, -jnp.inf)
        m = jnp.max(masked, axis=-1, keepdims=True)
        s = masked - m
        e = jnp.where(valid, jnp.exp(s), 0.0)
        lse = jnp.log(jnp.sum(e, axis=-1, keepdims=True))
        logp_ref[...] = jnp.where(valid, s - lse, 0.0)

    return kernel


# ------------------------------ wrapper --------------------------------------

def mlp_forward(x, params, output_dim):
    """Matches MLP.forward (norm=Identity, [Linear, ReLU]*L, log_softmax).

    `params` is a list of (w_t, b) with w_t shaped (in, out) and b shaped (1, out)
    — i.e. the PyTorch (out, in) weight already transposed.
    NOTE: self.dropout and self.embedding are never used in the PyTorch forward,
    so they are not applied here either.
    """
    B, in_f = x.shape
    num_layers = len(params)

    in_pad = _round_up(in_f, LANE)
    b_padded = _round_up(B, TILE_B)
    out_pad = _round_up(output_dim, LANE)

    # zero-pad the input (extra rows/cols are sliced off / multiplied by zeros)
    x_p = jnp.zeros((b_padded, in_pad), jnp.float32).at[:B, :in_f].set(x)

    flat_wb = []
    in_specs = [pl.BlockSpec((TILE_B, in_pad), lambda i: (i, 0))]
    for (w_t, b) in params:
        k, n = w_t.shape
        k_p, n_p = _round_up(k, LANE), _round_up(n, LANE)
        w_p = jnp.zeros((k_p, n_p), jnp.float32).at[:k, :n].set(w_t)
        b_p = jnp.zeros((1, n_p), jnp.float32).at[:, :n].set(b)
        flat_wb += [w_p, b_p]
        # constant index_map -> weight/bias DMA'd once and kept VMEM-resident
        in_specs += [
            pl.BlockSpec((k_p, n_p), lambda i: (0, 0)),
            pl.BlockSpec((1, n_p), lambda i: (0, 0)),
        ]

    grid = (b_padded // TILE_B,)
    kernel = _make_fused_mlp_kernel(num_layers, output_dim)

    logits_p, logp_p = pl.pallas_call(
        kernel,
        out_shape=(
            jax.ShapeDtypeStruct((b_padded, out_pad), jnp.float32),
            jax.ShapeDtypeStruct((b_padded, out_pad), jnp.float32),
        ),
        grid=grid,
        in_specs=in_specs,
        out_specs=(
            pl.BlockSpec((TILE_B, out_pad), lambda i: (i, 0)),
            pl.BlockSpec((TILE_B, out_pad), lambda i: (i, 0)),
        ),
        compiler_params=pltpu.CompilerParams(
            dimension_semantics=("parallel",),      # batch tiles are independent
            vmem_limit_bytes=32 * 1024 * 1024,      # well within v7x's 64 MiB
        ),
    )(x_p, *flat_wb)

    return {
        "logits": logits_p[:B, :output_dim],
        "log_preds": logp_p[:B, :output_dim],
    }


# --------------------------- parameter setup --------------------------------

def init_mlp_params(key, input_dim, output_dim, hidden_dim, num_layers):
    """Deterministic init mirroring nn.Linear default (uniform +/- 1/sqrt(fan_in))."""
    dims = [input_dim] + (num_layers - 1) * [hidden_dim] + [output_dim]
    params = []
    for i in range(len(dims) - 1):
        fan_in, fan_out = dims[i], dims[i + 1]
        key, kw, kb = jax.random.split(key, 3)
        bound = 1.0 / math.sqrt(fan_in)
        # PyTorch stores weight as (out, in); keep that convention then transpose.
        w = jax.random.uniform(kw, (fan_out, fan_in), jnp.float32, -bound, bound)
        b = jax.random.uniform(kb, (fan_out,), jnp.float32, -bound, bound)
        params.append((w.T, b.reshape(1, fan_out)))  # pass (in, out) + (1, out)
    return params


# --------------------------------- main --------------------------------------

if __name__ == "__main__":
    # small shapes consistent with "batch_size * input_dim" input
    batch = 16
    input_dim = 32
    hidden_dim = 32
    output_dim = 16
    num_layers = 3

    key = jax.random.PRNGKey(0)
    key, kx = jax.random.split(key)
    x = jax.random.normal(kx, (batch, input_dim), dtype=jnp.float32)

    params = init_mlp_params(key, input_dim, output_dim, hidden_dim, num_layers)

    out = mlp_forward(x, params, output_dim)
    jax.block_until_ready(out["logits"])
    jax.block_until_ready(out["log_preds"])

    # pure-JAX reference (same math as the PyTorch module)
    h = x
    for w_t, b in params:
        h = jnp.maximum(h @ w_t + b, 0.0)
    ref_logits = h
    ref_logp = jax.nn.log_softmax(h, axis=-1)

    assert out["logits"].shape == (batch, output_dim)
    assert out["log_preds"].shape == (batch, output_dim)
    assert bool(jnp.allclose(out["logits"], ref_logits, atol=1e-5, rtol=1e-5))
    assert bool(jnp.allclose(out["log_preds"], ref_logp, atol=1e-5, rtol=1e-5))
    row_sums = jnp.sum(jnp.exp(out["log_preds"]), axis=-1)
    assert bool(jnp.all(jnp.abs(row_sums - 1.0) < 1e-4))

    print("KERNEL_OK")
</pallas_src>

<mosaic_0001>
module attributes {stable_mosaic.version = 11 : i64} {
  func.func @kernel(%arg0: i32, %arg1: memref<8x128xf32, #tpu.memory_space<vmem>>, %arg2: memref<128x128xf32, #tpu.memory_space<vmem>>, %arg3: memref<1x128xf32, #tpu.memory_space<vmem>>, %arg4: memref<128x128xf32, #tpu.memory_space<vmem>>, %arg5: memref<1x128xf32, #tpu.memory_space<vmem>>, %arg6: memref<128x128xf32, #tpu.memory_space<vmem>>, %arg7: memref<1x128xf32, #tpu.memory_space<vmem>>, %arg8: memref<8x128xf32, #tpu.memory_space<vmem>>, %arg9: memref<8x128xf32, #tpu.memory_space<vmem>>) attributes {dimension_semantics = [#tpu.dimension_semantics<parallel>], iteration_bounds = array<i64: 2>, scalar_prefetch = 0 : i64, scratch_operands = 0 : i64, tpu.core_type = #tpu.core_type<tc>, window_params = [{transform_indices = @transform_0, window_bounds = array<i64: 8, 128>}, {pipeline_mode = #tpu.pipeline_mode<synchronous>, transform_indices = @transform_1, window_bounds = array<i64: 128, 128>}, {pipeline_mode = #tpu.pipeline_mode<synchronous>, transform_indices = @transform_2, window_bounds = array<i64: 1, 128>}, {pipeline_mode = #tpu.pipeline_mode<synchronous>, transform_indices = @transform_3, window_bounds = array<i64: 128, 128>}, {pipeline_mode = #tpu.pipeline_mode<synchronous>, transform_indices = @transform_4, window_bounds = array<i64: 1, 128>}, {pipeline_mode = #tpu.pipeline_mode<synchronous>, transform_indices = @transform_5, window_bounds = array<i64: 128, 128>}, {pipeline_mode = #tpu.pipeline_mode<synchronous>, transform_indices = @transform_6, window_bounds = array<i64: 1, 128>}, {transform_indices = @transform_7, window_bounds = array<i64: 8, 128>}, {transform_indices = @transform_8, window_bounds = array<i64: 8, 128>}]} {
    %c0 = arith.constant 0 : index
    %c0_0 = arith.constant 0 : index
    %0 = vector.load %arg1[%c0, %c0_0] : memref<8x128xf32, #tpu.memory_space<vmem>>, vector<8x128xf32>
    %c0_1 = arith.constant 0 : index
    %c0_2 = arith.constant 0 : index
    %1 = vector.load %arg2[%c0_1, %c0_2] : memref<128x128xf32, #tpu.memory_space<vmem>>, vector<128x128xf32>
    %c0_3 = arith.constant 0 : index
    %c0_4 = arith.constant 0 : index
    %2 = vector.load %arg3[%c0_3, %c0_4] : memref<1x128xf32, #tpu.memory_space<vmem>>, vector<1x128xf32>
    %cst = arith.constant dense<0.000000e+00> : vector<8x128xf32>
    %3 = tpu.matmul %0, %1, %cst {dimension_numbers = #tpu.dot_dimension_numbers<[1], [0], [0], [1], [0, 0, 1, 1], [], []>} : vector<8x128xf32>, vector<128x128xf32>, vector<8x128xf32> -> vector<8x128xf32>
    %4 = vector.broadcast %2 : vector<1x128xf32> to vector<8x128xf32>
    %5 = arith.addf %3, %4 : vector<8x128xf32>
    %cst_5 = arith.constant 0.000000e+00 : f32
    %6 = vector.broadcast %cst_5 : f32 to vector<8x128xf32>
    %7 = arith.maximumf %5, %6 : vector<8x128xf32>
    %c0_6 = arith.constant 0 : index
    %c0_7 = arith.constant 0 : index
    %8 = vector.load %arg4[%c0_6, %c0_7] : memref<128x128xf32, #tpu.memory_space<vmem>>, vector<128x128xf32>
    %c0_8 = arith.constant 0 : index
    %c0_9 = arith.constant 0 : index
    %9 = vector.load %arg5[%c0_8, %c0_9] : memref<1x128xf32, #tpu.memory_space<vmem>>, vector<1x128xf32>
    %cst_10 = arith.constant dense<0.000000e+00> : vector<8x128xf32>
    %10 = tpu.matmul %7, %8, %cst_10 {dimension_numbers = #tpu.dot_dimension_numbers<[1], [0], [0], [1], [0, 0, 1, 1], [], []>} : vector<8x128xf32>, vector<128x128xf32>, vector<8x128xf32> -> vector<8x128xf32>
    %11 = vector.broadcast %9 : vector<1x128xf32> to vector<8x128xf32>
    %12 = arith.addf %10, %11 : vector<8x128xf32>
    %cst_11 = arith.constant 0.000000e+00 : f32
    %13 = vector.broadcast %cst_11 : f32 to vector<8x128xf32>
    %14 = arith.maximumf %12, %13 : vector<8x128xf32>
    %c0_12 = arith.constant 0 : index
    %c0_13 = arith.constant 0 : index
    %15 = vector.load %arg6[%c0_12, %c0_13] : memref<128x128xf32, #tpu.memory_space<vmem>>, vector<128x128xf32>
    %c0_14 = arith.constant 0 : index
    %c0_15 = arith.constant 0 : index
    %16 = vector.load %arg7[%c0_14, %c0_15] : memref<1x128xf32, #tpu.memory_space<vmem>>, vector<1x128xf32>
    %cst_16 = arith.constant dense<0.000000e+00> : vector<8x128xf32>
    %17 = tpu.matmul %14, %15, %cst_16 {dimension_numbers = #tpu.dot_dimension_numbers<[1], [0], [0], [1], [0, 0, 1, 1], [], []>} : vector<8x128xf32>, vector<128x128xf32>, vector<8x128xf32> -> vector<8x128xf32>
    %18 = vector.broadcast %16 : vector<1x128xf32> to vector<8x128xf32>
    %19 = arith.addf %17, %18 : vector<8x128xf32>
    %cst_17 = arith.constant 0.000000e+00 : f32
    %20 = vector.broadcast %cst_17 : f32 to vector<8x128xf32>
    %21 = arith.maximumf %19, %20 : vector<8x128xf32>
    %c0_18 = arith.constant 0 : index
    %c0_19 = arith.constant 0 : index
    %22 = vector.load %arg8[%c0_18, %c0_19] : memref<8x128xf32, #tpu.memory_space<vmem>>, vector<8x128xf32>
    tpu.vector_store %arg8[%c0_18, %c0_19], %21 {strides = array<i32>} : memref<8x128xf32, #tpu.memory_space<vmem>>, vector<8x128xf32>,
    %23 = tpu.iota {dimensions = array<i32: 1>} : vector<8x128xi32>
    %c16_i32 = arith.constant 16 : i32
    %24 = vector.broadcast %c16_i32 : i32 to vector<8x128xi32>
    %25 = arith.cmpi slt, %23, %24 : vector<8x128xi32>
    %cst_20 = arith.constant 0xFF800000 : f32
    %26 = vector.broadcast %cst_20 : f32 to vector<8x128xf32>
    %27 = arith.select %25, %21, %26 : vector<8x128xi1>, vector<8x128xf32>
    %cst_21 = arith.constant dense<0xFF800000> : vector<8xf32>
    %28 = vector.multi_reduction <maximumf>, %27, %cst_21 [1] : vector<8x128xf32> to vector<8xf32>
    %29 = vector.shape_cast %28 : vector<8xf32> to vector<8x1xf32>
    %30 = vector.broadcast %29 : vector<8x1xf32> to vector<8x128xf32>
    %31 = arith.subf %27, %30 : vector<8x128xf32>
    %32 = math.exp %31 : vector<8x128xf32>
    %cst_22 = arith.constant 0.000000e+00 : f32
    %33 = vector.broadcast %cst_22 : f32 to vector<8x128xf32>
    %34 = arith.select %25, %32, %33 : vector<8x128xi1>, vector<8x128xf32>
    %cst_23 = arith.constant dense<0.000000e+00> : vector<8xf32>
    %35 = vector.multi_reduction <add>, %34, %cst_23 [1] : vector<8x128xf32> to vector<8xf32>
    %36 = vector.shape_cast %35 : vector<8xf32> to vector<8x1xf32>
    %37 = math.log %36 : vector<8x1xf32>
    %38 = vector.broadcast %37 : vector<8x1xf32> to vector<8x128xf32>
    %39 = arith.subf %31, %38 : vector<8x128xf32>
    %cst_24 = arith.constant 0.000000e+00 : f32
    %40 = vector.broadcast %cst_24 : f32 to vector<8x128xf32>
    %41 = arith.select %25, %39, %40 : vector<8x128xi1>, vector<8x128xf32>
    %c0_25 = arith.constant 0 : index
    %c0_26 = arith.constant 0 : index
    %42 = vector.load %arg9[%c0_25, %c0_26] : memref<8x128xf32, #tpu.memory_space<vmem>>, vector<8x128xf32>
    tpu.vector_store %arg9[%c0_25, %c0_26], %41 {strides = array<i32>} : memref<8x128xf32, #tpu.memory_space<vmem>>, vector<8x128xf32>,
    return
  }
  func.func @transform_0(%arg0: i32) -> (i32, i32) {
    %c0_i32 = arith.constant 0 : i32
    %c0_i32_0 = arith.constant 0 : i32
    return %arg0, %c0_i32 : i32, i32
  }
  func.func @transform_1(%arg0: i32) -> (i32, i32) {
    %c0_i32 = arith.constant 0 : i32
    %c0_i32_0 = arith.constant 0 : i32
    %c0_i32_1 = arith.constant 0 : i32
    return %c0_i32, %c0_i32_0 : i32, i32
  }
  func.func @transform_2(%arg0: i32) -> (i32, i32) {
    %c0_i32 = arith.constant 0 : i32
    %c0_i32_0 = arith.constant 0 : i32
    %c0_i32_1 = arith.constant 0 : i32
    return %c0_i32, %c0_i32_0 : i32, i32
  }
  func.func @transform_3(%arg0: i32) -> (i32, i32) {
    %c0_i32 = arith.constant 0 : i32
    %c0_i32_0 = arith.constant 0 : i32
    %c0_i32_1 = arith.constant 0 : i32
    return %c0_i32, %c0_i32_0 : i32, i32
  }
  func.func @transform_4(%arg0: i32) -> (i32, i32) {
    %c0_i32 = arith.constant 0 : i32
    %c0_i32_0 = arith.constant 0 : i32
    %c0_i32_1 = arith.constant 0 : i32
    return %c0_i32, %c0_i32_0 : i32, i32
  }
  func.func @transform_5(%arg0: i32) -> (i32, i32) {
    %c0_i32 = arith.constant 0 : i32
    %c0_i32_0 = arith.constant 0 : i32
    %c0_i32_1 = arith.constant 0 : i32
    return %c0_i32, %c0_i32_0 : i32, i32
  }
  func.func @transform_6(%arg0: i32) -> (i32, i32) {
    %c0_i32 = arith.constant 0 : i32
    %c0_i32_0 = arith.constant 0 : i32
    %c0_i32_1 = arith.constant 0 : i32
    return %c0_i32, %c0_i32_0 : i32, i32
  }
  func.func @transform_7(%arg0: i32) -> (i32, i32) {
    %c0_i32 = arith.constant 0 : i32
    %c0_i32_0 = arith.constant 0 : i32
    return %arg0, %c0_i32 : i32, i32
  }
  func.func @transform_8(%arg0: i32) -> (i32, i32) {
    %c0_i32 = arith.constant 0 : i32
    %c0_i32_0 = arith.constant 0 : i32
    return %arg0, %c0_i32 : i32, i32
  }
}

</mosaic_0001>

<bundles_post_ra>
// kernel: tpu_custom_call.1
= control target key start
LH: loop header
LB: loop body
LE: loop exit
PB: predicated region body
PF: predicated region fallthrough
CT: control target
= control target key end

     0   :  { %14 = vsyncpa [#allocation3], 0  ;;  %s1800_s0 = inlined_call_operand.hbm [shape: f32[16,128], index: 0, kind: input, shape index: {}]   ;;  %s1801_s1 = inlined_call_operand.hbm [shape: f32[128,128], index: 1, kind: input, shape index: {}]   ;;  %s1802_s2 = inlined_call_operand.vmem [shape: f32[1,128], index: 2, kind: input, shape index: {}]   ;;  %s1803_s3 = inlined_call_operand.hbm [shape: f32[128,128], index: 3, kind: input, shape index: {}]   ;;  %s1804_s4 = inlined_call_operand.vmem [shape: f32[1,128], index: 4, kind: input, shape index: {}]   ;;  %s1805_s5 = inlined_call_operand.hbm [shape: f32[128,128], index: 5, kind: input, shape index: {}]   ;;  %s1806_s6 = inlined_call_operand.vmem [shape: f32[1,128], index: 6, kind: input, shape index: {}]   ;;  %s1807_s7 = inlined_call_operand.hbm [shape: f32[16,128], index: 7, kind: output, shape index: {0}]   ;;  %s1808_s8 = inlined_call_operand.hbm [shape: f32[16,128], index: 8, kind: output, shape index: {1}]  }
   0x1   :  { %16 = vsyncpa [#allocation3 + $0x1], 0 }
   0x2   :  { %17 = vsyncpa [#allocation6], 0 }
   0x3   :  { %18 = vsyncpa [#allocation9], 0 }
   0x4   :  { %19 = vsyncpa [#allocation4], 0 }
   0x5   :  { %21 = vsyncpa [#allocation4 + $0x1], 0 }
   0x6   :  { %22 = vsyncpa [#allocation12], 0 }
   0x7   :  { %24 = vsyncpa [#allocation12 + $0x1], 0  ;;  %s1461_s27 = smov 0   ;;  %s1463_s28 = smov 0  }
   0x8   :  { %s1465_s29 = smov 0   ;;  %s1467_s30 = smov 0  }
   0x9 LB: > { %1814 = sst [smem:[#allocation18_spill]] %s1391_s27  ;;  %s1482_s9 = sadd.s32 4294967295, %s1403_s30   ;;  %s1403_s30 = sphi %s1467_s30, %s1837_s30   ;;  %s1399_s29 = sphi %s1465_s29, %s1836_s29   ;;  %s1395_s28 = sphi %s1463_s28, %s1835_s28   ;;  %s1391_s27 = sphi %s1461_s27, %s1834_s27  }
   0xa   : > { %s840_s10 = sadd.s32 4294967294, %s1403_s30   ;;  %p50_p0 = scmp.ne.s32.totalorder %s1395_s28, %s1391_s27 }
   0xb   : > { %p1809_p1 = scmp.eq.s32.totalorder %s1482_s9, 0  ;;  %p206_p3 = scmp.eq.s32.totalorder %s840_s10, 1 }
   0xc   : > { %p841_p5 = scmp.ge.s32.totalorder %s1403_s30, 1  ;;  %p239_p7 = scmp.lt.s32.totalorder %s1403_s30, 3 }
   0xd   : > { %p1491_p4 = por %p1809_p1, %p50_p0  ;;  %p1496_p6 = por %p206_p3, %p50_p0 }
   0xe   : > { %p1501_p8 = pnand %p841_p5, %p239_p7  ;;  %s1405_s14 = smov [#allocation5]  }
   0xf   : > { %s1815_s11 = scalar_select %p1491_p4, 1, 0 }
  0x10   : > { %s1816_s12 = scalar_select %p1496_p6, 1, 0 }
  0x11   : > { %s1818_s13 = scalar_select %p1501_p8, 1, 0 }
  0x12   : > { %1817 = sst [smem:[#allocation19_spill]] %s1816_s12  ;;  %s251_s15 = sshll.u32 %s1405_s14, 4  ;;  %s1505_s15 = int_to_ptr.vmem [resolvable:$true] %s251_s15 }
  0x13   : > { %p1110_p9 = pneg %p1501_p8  ;;  %s1406_s17 = smov [#allocation7]  }
  0x14   : > { %s267_s18 = sshll.u32 %s1406_s17, 4  ;;  %s1407_s19 = smov [#allocation8]   ;;  %s1516_s18 = int_to_ptr.vmem [resolvable:$true] %s267_s18 }
  0x15   : > { %p1512_p11 = pnand %p1110_p9, %p1809_p1  ;;  %s1518_s20 = sshll.u32 %s1407_s19, 4  ;;  %s284_s20 = int_to_ptr.vmem [resolvable:$true] %s1518_s20 }
  0x16   : > { %s1183_s23 = scalar_lea.hbm %s1801_s1, 2048 }
  0x17   : > { %p1184_p12 = scmp.ne.s32.totalorder %s1801_s1, %s1183_s23  ;;  %p1528_p13 = pneg %p1512_p11 }
  0x18   : > { %p1190_p5 = scmp.lt.u32.totalorder %s1183_s23, %s1801_s1 }
  0x19   : > { %p1186_p0 = pnand %p1528_p13, %p1184_p12 }
  0x1b   : > { %p1187_p3 = pneg %p1186_p0 }
  0x1d   : > { %p1192_p7 = pnand %p1190_p5, %p1187_p3 }
  0x1f   : > { %1195 = shalt.err (!%p1192_p7)
}
  0x20   : > { %s1196_s17 = scalar_lea.vmem %s1505_s15, 2048  ;;  %p1204_p2 = scmp.lt.s32.totalorder %s1505_s15, %s1505_s15 }
  0x21   : > { %p1197_p9 = scmp.ne.s32.totalorder %s1505_s15, %s1196_s17  ;;  %p1205_p6 = scmp.lt.s32.totalorder %s1196_s17, %s1196_s17 }
  0x23   : > { %p1199_p10 = pnand %p1197_p9, %p1528_p13  ;;  %p1206_p12 = por %p1205_p6, %p1204_p2 }
  0x25   : > { %p1200_p1 = pneg %p1199_p10 }
  0x27   : > { %p1207_p0 = pnand %p1206_p12, %p1200_p1 }
  0x29   : > { %1210 = shalt.err (!%p1207_p0)
}
  0x2a   : > { %s1408_s19 = smov 128   ;;  %s1409_s21 = smov 8  }
  0x2b   : > { %1113 = dma.hbm_to_vmem [thread:$0]  (!%p1512_p11), %s1801_s1, 2048, %s1505_s15, [#allocation6], %s1408_s19, %s1408_s19, %s1409_s21  }
  0x2c   : > { %s1211_s10 = scalar_lea.hbm %s1803_s3, 2048 }
  0x2d   : > { %p1212_p1 = scmp.ne.s32.totalorder %s1803_s3, %s1211_s10  ;;  %p1218_p10 = scmp.lt.u32.totalorder %s1211_s10, %s1803_s3 }
  0x2f   : > { %p1214_p2 = pnand %p1212_p1, %p1528_p13 }
  0x31   : > { %p1215_p6 = pneg %p1214_p2 }
  0x33   : > { %p1220_p3 = pnand %p1218_p10, %p1215_p6 }
  0x35   : > { %1223 = shalt.err (!%p1220_p3)
}
  0x36   : > { %s1224_s15 = scalar_lea.vmem %s1516_s18, 2048  ;;  %p1232_p12 = scmp.lt.s32.totalorder %s1516_s18, %s1516_s18 }
  0x37   : > { %p1225_p5 = scmp.ne.s32.totalorder %s1516_s18, %s1224_s15  ;;  %p1233_p0 = scmp.lt.s32.totalorder %s1224_s15, %s1224_s15 }
  0x39   : > { %p1227_p7 = pnand %p1225_p5, %p1528_p13  ;;  %p1234_p1 = por %p1233_p0, %p1232_p12 }
  0x3b   : > { %p1228_p9 = pneg %p1227_p7 }
  0x3d   : > { %p1235_p2 = pnand %p1234_p1, %p1228_p9 }
  0x3f   : > { %1238 = shalt.err (!%p1235_p2)
}
  0x40   : > { %1116 = dma.hbm_to_vmem [thread:$0]  (!%p1512_p11), %s1803_s3, 2048, %s1516_s18, [#allocation6], %s1408_s19, %s1408_s19, %s1409_s21  }
  0x41   : > { %s1239_s24 = scalar_lea.hbm %s1805_s5, 2048 }
  0x42   : > { %p1240_p6 = scmp.ne.s32.totalorder %s1805_s5, %s1239_s24  ;;  %p1246_p5 = scmp.lt.u32.totalorder %s1239_s24, %s1805_s5 }
  0x44   : > { %p1242_p10 = pnand %p1240_p6, %p1528_p13 }
  0x46   : > { %p1243_p3 = pneg %p1242_p10 }
  0x48   : > { %p1248_p7 = pnand %p1246_p5, %p1243_p3 }
  0x4a   : > { %1251 = shalt.err (!%p1248_p7)
}
  0x4b   : > { %s1252_s15 = scalar_lea.vmem %s284_s20, 2048  ;;  %p1260_p1 = scmp.lt.s32.totalorder %s284_s20, %s284_s20 }
  0x4c   : > { %p1253_p9 = scmp.ne.s32.totalorder %s284_s20, %s1252_s15  ;;  %p1261_p2 = scmp.lt.s32.totalorder %s1252_s15, %s1252_s15 }
  0x4e   : > { %p1255_p12 = pnand %p1253_p9, %p1528_p13  ;;  %p1262_p4 = por %p1261_p2, %p1260_p1 }
  0x50   : > { %p1256_p0 = pneg %p1255_p12 }
  0x52   : > { %p1263_p8 = pnand %p1262_p4, %p1256_p0 }
  0x54   : > { %1266 = shalt.err (!%p1263_p8)
}
  0x55   : > { %1119 = dma.hbm_to_vmem [thread:$0]  (!%p1512_p11), %s1805_s5, 2048, %s284_s20, [#allocation9], %s1408_s19, %s1408_s19, %s1409_s21  }
  0x56   : > { %s1601_s26 = sadd.s32 1, %s1403_s30   ;;  %s37_s12 = sadd.s32 1, %s1399_s29 }
  0x57   : > { %s34_s16 = ssub.s32 %s1403_s30, %s1601_s26  ;;  %p44_p8 = scmp.ne.s32.totalorder %s1399_s29, %s1395_s28 }
  0x58   : > { %p35_p4 = scmp.eq.s32.totalorder %s34_s16, 0  ;;  %p45_p13 = scmp.eq.s32.totalorder %s1403_s30, 0 }
  0x59   : > { %p1134_p6 = scmp.lt.s32.totalorder %s1403_s30, 2  ;;  %p1821_p3 = scmp.eq.s32.totalorder %s1482_s9, 1 }
  0x5a   : > { %s1611_s22 = scalar_select %p35_p4, %s1399_s29, %s37_s12  }
  0x5b   : > { %p46_p10 = por %p45_p13, %p44_p8  ;;  %p1615_p5 = por %p1821_p3, %p44_p8 }
  0x5c   : > { %s300_s24 = sand.u32 1, %s1399_s29   ;;  %s847_s25 = sshll.u32 %s1403_s30, 7 }
  0x5d   : > { %s846_s20 = sshll.u32 %s300_s24, 3  ;;  %s1624_s10 = scalar_lea.hbm %s1800_s0, %s847_s25 }
  0x5e   : > { %s304_s14 = scalar_lea.vmem [#allocation2], %s846_s20  ;;  %p1626_p11 = pnand %p1134_p6, %p46_p10 }
  0x5f   : > { %s311_s17 = sshll.u32 %s304_s14, 4  ;;  %s301_s18 = scalar_lea.sflag [#allocation3], %s300_s24  ;;  %s1630_s17 = int_to_ptr.vmem [resolvable:$true] %s311_s17 }
  0x60   : > { %s1267_s27 = scalar_lea.hbm %s1624_s10, 128  ;;  %p1269_p9 = pneg %p1626_p11 }
  0x61   : > { %p1268_p7 = scmp.ne.s32.totalorder %s1624_s10, %s1267_s27  ;;  %s1272_s25 = scalar_lea.hbm %s1800_s0, 256 }
  0x62   : > { %p1273_p1 = scmp.lt.u32.totalorder %s1624_s10, %s1800_s0  ;;  %p1274_p2 = scmp.lt.u32.totalorder %s1272_s25, %s1267_s27 }
  0x63   : > { %p1270_p12 = pnand %p1269_p9, %p1268_p7  ;;  %p1276_p8 = scmp.lt.u32.totalorder %s1267_s27, %s1624_s10 }
  0x64   : > { %p1275_p4 = por %p1274_p2, %p1273_p1 }
  0x65   : > { %p1271_p0 = pneg %p1270_p12 }
  0x66   : > { %p1277_p13 = por %p1276_p8, %p1275_p4 }
  0x68   : > { %p1278_p6 = pnand %p1277_p13, %p1271_p0 }
  0x6a   : > { %1281 = shalt.err (!%p1278_p6)
}
  0x6b   : > { %s1282_s24 = scalar_lea.vmem %s1630_s17, 128  ;;  %s1410_s21 = smov [#allocation2]  }
  0x6c   : > { %p1283_p10 = scmp.ne.s32.totalorder %s1630_s17, %s1282_s24  ;;  %s1287_s14 = sshll.u32 %s1410_s21, 4  ;;  %s1288_s14 = int_to_ptr.vmem [resolvable:$false] %s1287_s14 }
  0x6d   : > { %s1289_s16 = scalar_lea.vmem %s1288_s14, 256  ;;  %p1290_p12 = scmp.lt.s32.totalorder %s1630_s17, %s1288_s14 }
  0x6e   : > { %p1285_p3 = pnand %p1283_p10, %p1269_p9  ;;  %p1291_p1 = scmp.lt.s32.totalorder %s1289_s16, %s1282_s24 }
  0x70   : > { %p1286_p7 = pneg %p1285_p3  ;;  %p1292_p2 = por %p1291_p1, %p1290_p12 }
  0x72   : > { %p1293_p4 = pnand %p1292_p2, %p1286_p7 }
  0x74   : > { %1296 = shalt.err (!%p1293_p4)
}
  0x75   : > { %1123 = dma.hbm_to_vmem [thread:$0]  (!%p1626_p11), %s1624_s10, 128, %s1630_s17, %s301_s18  }
  0x76   : > { %p1824_p0 = scmp.ne.s32.totalorder %s1818_s13, 0 }
  0x77   : > { %s1660_s27 = sand.u32 (!%p1824_p0), 1, %s1395_s28   ;;  %p1825_p9 = scmp.ne.s32.totalorder (!%p1824_p0), %s1815_s11, 0 }
  0x78   : > { %320 = sbr.rel (%p1824_p0) target bundleno = 1149 (0x47d), region = 48  ;;  %s1663_s12 = sshll.u32 (!%p1824_p0), %s1660_s27, 3 }
  0x79   : > { %s323_s25 = scalar_lea.sflag (!%p1824_p0), [#allocation3], %s1660_s27  ;;  %s326_s20 = scalar_lea.vmem (!%p1824_p0), [#allocation2], %s1663_s12 }
  0x7f   : > { %1370 = dma.done.wait (%p1825_p9), %s323_s25, 128  }
  0x80   : > { %1372 = vsyncadd (%p1825_p9), %s323_s25, 4294967168  ;;  %p1826_p11 = scmp.eq.s32.totalorder %s1482_s9, 0 }
  0x82   : > { %1374 = dma.done.wait (%p1826_p11), [#allocation6], 4096   ;;  %p1827_p8 = pmov %p1826_p11 }
  0x84   : > { %1376 = vsyncadd (%p1827_p8), [#allocation6], 4294963200  ;;  %p1828_p13 = pmov %p1827_p8 }
  0x85   : > { %p1829_p6 = pmov %p1827_p8 }
  0x86   : > { %1378 = dma.done.wait (%p1828_p13), [#allocation9], 2048  }
  0x87   : > { %1380 = vsyncadd (%p1829_p6), [#allocation9], 4294965248  ;;  %v1411_v0 = vmov 0.0|0.0   ;;  %vm1412_vm0 = vmmov 0   ;;  %v1413_v1 = vmov 0.0   ;;  %v377_v2 = vld [vmem:[#allocation5] sm:$0xff] }
  0x88   : > { %1020 = vmatprep.subr.bf16.mxu0 %v1411_v0  ;;  %947 = vmatprep.mubr.msk.f32.mxu0 %vm1412_vm0, %v1413_v1  ;;  %v378_v3 = vld [vmem:[#allocation5 + $0x8] sm:$0xff]  ;;  %v379_v4 = vld [vmem:[#allocation5 + $0x10] sm:$0xff]  ;;  %v380_v6 = vld [vmem:[#allocation5 + $0x18] sm:$0xff]  ;;  %s368_s19 = scalar_lea.vmem [#allocation10], %s1663_s12  ;;  %s860_s24 = sshll.u32 %s1482_s9, 7 }
  0x89   : > { %1044 = vmatprep.subr.bf16.mxu1 %v1411_v0  ;;  %982 = vmatprep.mubr.msk.f32.mxu1 %vm1412_vm0, %v1413_v1  ;;  %v1021_v5 = vpack.c.bf16 %v378_v3, %v377_v2  ;;  %v1024_v7 = vpack.c.bf16 %v380_v6, %v379_v4  ;;  %v381_v8 = vld [vmem:[#allocation5 + $0x20] sm:$0xff]  ;;  %v382_v9 = vld [vmem:[#allocation5 + $0x28] sm:$0xff]  ;;  %v473_v12 = vld [vmem:[#allocation7 + $0x10] sm:$0xff]  ;;  %s1729_s16 = scalar_lea.hbm %s1807_s7, %s860_s24  ;;  %s696_s25 = sshll.u32 %s368_s19, 4  ;;  %s697_s25 = int_to_ptr.vmem [resolvable:$true] %s696_s25 }
  0x8a   : > { %v471_v10 = vld [vmem:[#allocation7] sm:$0xff]  ;;  %v472_v11 = vld [vmem:[#allocation7 + $0x8] sm:$0xff]  ;;  %v474_v13 = vld [vmem:[#allocation7 + $0x18] sm:$0xff]  ;;  %v1027_v14 = vpack.c.bf16 %v382_v9, %v381_v8  ;;  %s1297_s11 = scalar_lea.vmem %s697_s25, 128  ;;  %s1414_s13 = smov [#allocation10]  }
  0x8b   : > { %1022 = vmatpush3.bf16.msra.mxu0 %v1021_v5  ;;  %v1045_v15 = vpack.c.bf16 %v472_v11, %v471_v10  ;;  %v383_v16 = vld [vmem:[#allocation5 + $0x30] sm:$0xff]  ;;  %v384_v17 = vld [vmem:[#allocation5 + $0x38] sm:$0xff]  ;;  %v1048_v18 = vpack.c.bf16 %v474_v13, %v473_v12  ;;  %v475_v19 = vld [vmem:[#allocation7 + $0x20] sm:$0xff]  ;;  %p1298_p10 = scmp.ne.s32.totalorder %s697_s25, %s1297_s11  ;;  %s1301_s10 = sshll.u32 %s1414_s13, 4  ;;  %s1302_s10 = int_to_ptr.vmem [resolvable:$false] %s1301_s10 }
  0x8c   : > { %1023 = vmatprep.subr.bf16.mxu0 %v1411_v0  ;;  %v476_v20 = vld [vmem:[#allocation7 + $0x28] sm:$0xff]  ;;  %v1030_v21 = vpack.c.bf16 %v384_v17, %v383_v16  ;;  %v385_v22 = vld [vmem:[#allocation5 + $0x40] sm:$0xff]  ;;  %v477_v25 = vld [vmem:[#allocation7 + $0x30] sm:$0xff]  ;;  %s1303_s17 = scalar_lea.vmem %s1302_s10, 256  ;;  %p1304_p12 = scmp.lt.s32.totalorder %s697_s25, %s1302_s10 }
  0x8d   : > { %1046 = vmatpush3.bf16.msra.mxu1 %v1045_v15  ;;  %v386_v23 = vld [vmem:[#allocation5 + $0x48] sm:$0xff]  ;;  %v1051_v24 = vpack.c.bf16 %v476_v20, %v475_v19  ;;  %v478_v26 = vld [vmem:[#allocation7 + $0x38] sm:$0xff]  ;;  %v387_v28 = vld [vmem:[#allocation5 + $0x50] sm:$0xff]  ;;  %p1299_p3 = pnand %p1298_p10, %p1615_p5  ;;  %p1305_p1 = scmp.lt.s32.totalorder %s1303_s17, %s1297_s11 }
  0x8e   : > { %1047 = vmatprep.subr.bf16.mxu1 %v1411_v0  ;;  %v1033_v27 = vpack.c.bf16 %v386_v23, %v385_v22  ;;  %v388_v29 = vld [vmem:[#allocation5 + $0x58] sm:$0xff]  ;;  %v1054_v30 = vpack.c.bf16 %v478_v26, %v477_v25  ;;  %v479_v31 = vld [vmem:[#allocation7 + $0x40] sm:$0xff]  ;;  %v480_v32 = vld [vmem:[#allocation7 + $0x48] sm:$0xff] }
  0x8f   : > { %1025 = vmatpush3.bf16.msra.mxu0 %v1024_v7  ;;  %v1036_v33 = vpack.c.bf16 %v388_v29, %v387_v28  ;;  %v389_v34 = vld [vmem:[#allocation5 + $0x60] sm:$0xff]  ;;  %v390_v35 = vld [vmem:[#allocation5 + $0x68] sm:$0xff]  ;;  %v1057_v36 = vpack.c.bf16 %v480_v32, %v479_v31  ;;  %v481_v37 = vld [vmem:[#allocation7 + $0x50] sm:$0xff]  ;;  %p1300_p7 = pneg %p1299_p3  ;;  %p1306_p2 = por %p1305_p1, %p1304_p12 }
  0x90   : > { %1026 = vmatprep.subr.bf16.mxu0 %v1411_v0  ;;  %v482_v38 = vld [vmem:[#allocation7 + $0x58] sm:$0xff]  ;;  %v1039_v39 = vpack.c.bf16 %v390_v35, %v389_v34  ;;  %v391_v40 = vld [vmem:[#allocation5 + $0x70] sm:$0xff]  ;;  %v483_v43 = vld [vmem:[#allocation7 + $0x60] sm:$0xff] }
  0x91   : > { %1049 = vmatpush3.bf16.msra.mxu1 %v1048_v18  ;;  %v392_v41 = vld [vmem:[#allocation5 + $0x78] sm:$0xff]  ;;  %v1060_v42 = vpack.c.bf16 %v482_v38, %v481_v37  ;;  %v484_v44 = vld [vmem:[#allocation7 + $0x68] sm:$0xff]  ;;  %v485_v48 = vld [vmem:[#allocation7 + $0x70] sm:$0xff]  ;;  %p1307_p4 = pnand %p1306_p2, %p1300_p7 }
  0x92   : > { %1050 = vmatprep.subr.bf16.mxu1 %v1411_v0  ;;  %v1042_v45 = vpack.c.bf16 %v392_v41, %v391_v40  ;;  %v1063_v46 = vpack.c.bf16 %v484_v44, %v483_v43  ;;  %v376_v47 = vld [vmem:[%s326_s20] sm:$0xff]  ;;  %v565_v51 = vld [vmem:[#allocation8] sm:$0xff]  ;;  %v566_v52 = vld [vmem:[#allocation8 + $0x8] sm:$0xff]  ;;  %s678_s20 = scalar_lea.sflag [#allocation4], %s1660_s27 }
  0x93   : > { %1028 = vmatpush3.bf16.msra.mxu0 %v1027_v14  ;;  %v486_v49 = vld [vmem:[#allocation7 + $0x78] sm:$0xff]  ;;  %v567_v53 = vld [vmem:[#allocation8 + $0x10] sm:$0xff]  ;;  %v1069_v54 = vpack.c.bf16 %v566_v52, %v565_v51  ;;  %v569_v57 = vld [vmem:[#allocation8 + $0x20] sm:$0xff] }
  0x94   : > { %1029 = vmatprep.subr.bf16.mxu0 %v1411_v0  ;;  %v1066_v50 = vpack.c.bf16 %v486_v49, %v485_v48  ;;  %v568_v55 = vld [vmem:[#allocation8 + $0x18] sm:$0xff]  ;;  %v570_v58 = vld [vmem:[#allocation8 + $0x28] sm:$0xff]  ;;  %v571_v60 = vld [vmem:[#allocation8 + $0x30] sm:$0xff] }
  0x95   : > { %1052 = vmatpush3.bf16.msra.mxu1 %v1051_v24  ;;  %v1072_v56 = vpack.c.bf16 %v568_v55, %v567_v53  ;;  %v1075_v59 = vpack.c.bf16 %v570_v58, %v569_v57  ;;  %v572_v61 = vld [vmem:[#allocation8 + $0x38] sm:$0xff]  ;;  %v573_v63 = vld [vmem:[#allocation8 + $0x40] sm:$0xff]  ;;  %v575_v3 = vld [vmem:[#allocation8 + $0x50] sm:$0xff] }
  0x96   : > { %1053 = vmatprep.subr.bf16.mxu1 %v1411_v0  ;;  %v1078_v62 = vpack.c.bf16 %v572_v61, %v571_v60  ;;  %v576_v4 = vld [vmem:[#allocation8 + $0x58] sm:$0xff]  ;;  %v577_v6 = vld [vmem:[#allocation8 + $0x60] sm:$0xff]  ;;  %v578_v7 = vld [vmem:[#allocation8 + $0x68] sm:$0xff] }
  0x97   : > { %1031 = vmatpush3.bf16.msra.mxu0 %v1030_v21  ;;  %v1084_v5 = vpack.c.bf16 %v576_v4, %v575_v3  ;;  %v1087_v8 = vpack.c.bf16 %v578_v7, %v577_v6  ;;  %v855_v9 = vld [vmem:[%s1802_s2] ss:$0 sm:$0xff]  ;;  %v580_v15 = vld [vmem:[#allocation8 + $0x78] sm:$0xff]  ;;  %v660_v21 = vlaneseq }
  0x98   : > { %1032 = vmatprep.subr.bf16.mxu0 %v1411_v0  ;;  %v579_v14 = vld [vmem:[#allocation8 + $0x70] sm:$0xff] }
  0x99   : > { %1055 = vmatpush3.bf16.msra.mxu1 %v1054_v30  ;;  %v1090_v16 = vpack.c.bf16 %v580_v15, %v579_v14  ;;  %v856_v17 = vld [vmem:[%s1804_s4] ss:$0 sm:$0xff]  ;;  %v661_v23 = vand.u32 127, %v660_v21 }
  0x9a   : > { %1056 = vmatprep.subr.bf16.mxu1 %v1411_v0  ;;  %v857_v22 = vld [vmem:[%s1806_s6] ss:$0 sm:$0xff] }
  0x9b   : > { %1034 = vmatpush3.bf16.msra.mxu0 %v1033_v27  ;;  %vm662_vm1 = vcmp.lt.s32.totalorder %v661_v23, 16 }
  0x9c   : > { %1035 = vmatprep.subr.bf16.mxu0 %v1411_v0 }
  0x9d   : > { %1058 = vmatpush3.bf16.msra.mxu1 %v1057_v36 }
  0x9e   : > { %1059 = vmatprep.subr.bf16.mxu1 %v1411_v0 }
  0x9f   : > { %1037 = vmatpush3.bf16.msra.mxu0 %v1036_v33 }
  0xa0   : > { %1038 = vmatprep.subr.bf16.mxu0 %v1411_v0 }
  0xa1   : > { %1061 = vmatpush3.bf16.msra.mxu1 %v1060_v42 }
  0xa2   : > { %1062 = vmatprep.subr.bf16.mxu1 %v1411_v0 }
  0xa3   : > { %1040 = vmatpush3.bf16.msra.mxu0 %v1039_v39 }
  0xa4   : > { %1041 = vmatprep.subr.bf16.mxu0 %v1411_v0 }
  0xa5   : > { %1064 = vmatpush3.bf16.msra.mxu1 %v1063_v46 }
  0xa6   : > { %1065 = vmatprep.subr.bf16.mxu1 %v1411_v0 }
  0xa7   : > { %1043 = vmatpush3.bf16.msra.mxu0 %v1042_v45 }
  0xa8   : > { %1068 = vmatprep.subr.bf16.mxu0 %v1411_v0 }
  0xa9   : > { %1067 = vmatpush3.bf16.msra.mxu1 %v1066_v50 }
  0xaa   : > { %948 = vmatmul.mubr.f32.vlgmr.msra.gmra.mrb[0].mxu0 %v376_v47 }
  0xab   : > { %1017 = vmatprep.mubr.msk.f32.mxu0 %vm1412_vm0, %v1413_v1  ;;  %1070 = vmatpush3.bf16.msra.mxu0 %v1069_v54  ;;  %v574_v1 = vld [vmem:[#allocation8 + $0x48] sm:$0xff] }
  0xac   : > { %1071 = vmatprep.subr.bf16.mxu0 %v1411_v0  ;;  %v1081_v2 = vpack.c.bf16 %v574_v1, %v573_v63 }
  0xaf   : > { %1073 = vmatpush3.bf16.msra.mxu0 %v1072_v56 }
  0xb0   : > { %1074 = vmatprep.subr.bf16.mxu0 %v1411_v0 }
  0xb3   : > { %1076 = vmatpush3.bf16.msra.mxu0 %v1075_v59 }
  0xb4   : > { %1077 = vmatprep.subr.bf16.mxu0 %v1411_v0 }
  0xb7   : > { %1079 = vmatpush3.bf16.msra.mxu0 %v1078_v62 }
  0xb8   : > { %1080 = vmatprep.subr.bf16.mxu0 %v1411_v0 }
  0xbb   : > { %1082 = vmatpush3.bf16.msra.mxu0 %v1081_v2 }
  0xbc   : > { %1083 = vmatprep.subr.bf16.mxu0 %v1411_v0 }
  0xbf   : > { %1085 = vmatpush3.bf16.msra.mxu0 %v1084_v5 }
  0xc0   : > { %1086 = vmatprep.subr.bf16.mxu0 %v1411_v0 }
  0xc3   : > { %1088 = vmatpush3.bf16.msra.mxu0 %v1087_v8 }
  0xc4   : > { %1089 = vmatprep.subr.bf16.mxu0 %v1411_v0 }
  0xc7   : > { %1091 = vmatpush3.bf16.msra.mxu0 %v1090_v16 }
 0x17d   : > { %v466_v10 = vpop.f32.mrb[0].mxu0 }
 0x17e   : > { %v467_v11 = vadd.f32 %v855_v9, %v466_v10  ;;  %v949_v12 = vpop.f32.mrb[1].mxu0 }
 0x180   : > { %v470_v13 = vmax.f32 %v467_v11, 0.0 }
 0x182   : > { %983 = vmatmul.mubr.f32.vlgmr.msra.gmra.mrb[0].mxu1 %v470_v13 }
 0x255   : > { %v560_v18 = vpop.f32.mrb[0].mxu1 }
 0x256   : > { %v561_v0 = vadd.f32 %v856_v17, %v560_v18  ;;  %v984_v19 = vpop.f32.mrb[1].mxu1 }
 0x258   : > { %v564_v20 = vmax.f32 %v561_v0, 0.0 }
 0x25a   : > { %1018 = vmatmul.mubr.f32.vlgmr.msra.gmra.mrb[2].mxu0 %v564_v20 }
 0x32d   : > { %v654_v24 = vpop.f32.mrb[2].mxu0 }
 0x32e   : > { %v655_v25 = vadd.f32 %v857_v22, %v654_v24  ;;  %v1019_v26 = vpop.f32.mrb[3].mxu0 }
 0x330   : > { %v658_v27 = vmax.f32 %v655_v25, 0.0 }
 0x332   : > { %659 = vst [vmem:[%s368_s19] sm:$0xff] %v658_v27  ;;  %v663_v28 = vsel %vm662_vm1, %v658_v27, -inf }
 0x333   : > { %664 = vmax.xlane.f32.xlu0 %v663_v28 }
 0x3c0   : > { %v665_v29 = vpop.xlane.xlu0 %664 }
 0x3c1   : > { %v666_v30 = vsub.f32 %v663_v28, %v665_v29 }
 0x3c3   : > { %v667_v31 = vmul.f32 1.442695, %v666_v30 }
 0x3c5   : > { %1179 = vpow2.f32 %v667_v31 }
 0x3cf   : > { %v1180_v32 = vpop.eup %1179 }
 0x3d0   : > { %v669_v33 = vsel %vm662_vm1, %v1180_v32, 0.0 }
 0x3d1   : > { %670 = vadd.xlane.f32.xlu0 %v669_v33 }
 0x3d2   : > { %1310 = shalt.err (!%p1307_p4)
}
 0x3d3   : > { %s1311_s15 = scalar_lea.hbm %s1729_s16, 128  ;;  %s1315_s21 = scalar_lea.hbm %s1807_s7, 256 }
 0x3d4   : > { %p1312_p0 = scmp.ne.s32.totalorder %s1729_s16, %s1311_s15  ;;  %p1316_p8 = scmp.lt.u32.totalorder %s1729_s16, %s1807_s7 }
 0x3d5   : > { %p1317_p13 = scmp.lt.u32.totalorder %s1315_s21, %s1311_s15  ;;  %p1319_p10 = scmp.lt.u32.totalorder %s1311_s15, %s1729_s16 }
 0x3d6   : > { %p1313_p9 = pnand %p1312_p0, %p1615_p5 }
 0x3d7   : > { %p1318_p6 = por %p1317_p13, %p1316_p8 }
 0x3d8   : > { %p1314_p11 = pneg %p1313_p9 }
 0x3d9   : > { %p1320_p3 = por %p1319_p10, %p1318_p6 }
 0x3db   : > { %p1321_p7 = pnand %p1320_p3, %p1314_p11 }
 0x3dd   : > { %1324 = shalt.err (!%p1321_p7)
}
 0x3de   : > { %1106 = dma.vmem_to_hbm [thread:$0]  (%p1615_p5), %s697_s25, 128, %s1729_s16, %s678_s20  }
 0x3df   : > { %s375_s11 = scalar_lea.vmem [#allocation11], %s1663_s12  ;;  %s1755_s18 = scalar_lea.hbm %s1808_s8, %s860_s24 }
 0x3e0   : > { %s709_s10 = sshll.u32 %s375_s11, 4  ;;  %s683_s16 = scalar_lea.sflag [#allocation12], %s1660_s27  ;;  %s1757_s10 = int_to_ptr.vmem [resolvable:$true] %s709_s10 }
 0x3e1   : > { %s1325_s25 = scalar_lea.vmem %s1757_s10, 128  ;;  %s1415_s9 = smov [#allocation11]  }
 0x3e2   : > { %p1326_p12 = scmp.ne.s32.totalorder %s1757_s10, %s1325_s25  ;;  %s1329_s12 = sshll.u32 %s1415_s9, 4  ;;  %s1330_s12 = int_to_ptr.vmem [resolvable:$false] %s1329_s12 }
 0x3e3   : > { %s1331_s20 = scalar_lea.vmem %s1330_s12, 256  ;;  %p1332_p4 = scmp.lt.s32.totalorder %s1757_s10, %s1330_s12 }
 0x3e4   : > { %p1327_p1 = pnand %p1326_p12, %p1615_p5  ;;  %p1333_p0 = scmp.lt.s32.totalorder %s1331_s20, %s1325_s25 }
 0x3e6   : > { %p1328_p2 = pneg %p1327_p1  ;;  %p1334_p9 = por %p1333_p0, %p1332_p4 }
 0x3e8   : > { %p1335_p11 = pnand %p1334_p9, %p1328_p2 }
 0x45e   : > { %v671_v34 = vpop.xlane.xlu0 %670 }
 0x45f   : > { %1181 = vlog2.f32 %v671_v34 }
 0x469   : > { %v1182_v35 = vpop.eup %1181 }
 0x46a   : > { %v673_v36 = vmul.f32 0.6931472, %v1182_v35 }
 0x46c   : > { %v674_v37 = vsub.f32 %v666_v30, %v673_v36 }
 0x46e   : > { %v675_v38 = vsel %vm662_vm1, %v674_v37, 0.0 }
 0x46f   : > { %676 = vst [vmem:[%s375_s11] sm:$0xff] %v675_v38 }
 0x470   : > { %1338 = shalt.err (!%p1335_p11)
}
 0x471   : > { %s1339_s27 = scalar_lea.hbm %s1755_s18, 128  ;;  %s1343_s21 = scalar_lea.hbm %s1808_s8, 256 }
 0x472   : > { %p1340_p8 = scmp.ne.s32.totalorder %s1755_s18, %s1339_s27  ;;  %p1344_p10 = scmp.lt.u32.totalorder %s1755_s18, %s1808_s8 }
 0x473   : > { %p1345_p3 = scmp.lt.u32.totalorder %s1343_s21, %s1339_s27  ;;  %p1347_p12 = scmp.lt.u32.totalorder %s1339_s27, %s1755_s18 }
 0x474   : > { %p1341_p13 = pnand %p1340_p8, %p1615_p5 }
 0x475   : > { %p1346_p7 = por %p1345_p3, %p1344_p10 }
 0x476   : > { %p1342_p6 = pneg %p1341_p13 }
 0x477   : > { %p1348_p1 = por %p1347_p12, %p1346_p7 }
 0x479   : > { %p1349_p2 = pnand %p1348_p1, %p1342_p6 }
 0x47b   : > { %1352 = shalt.err (!%p1349_p2)
}
 0x47c   : > { %1107 = dma.vmem_to_hbm [thread:$0]  (%p1615_p5), %s1757_s10, 128, %s1755_s18, %s683_s16  }
 0x47d PF: > { %s1830_s11 = sld [smem:[#allocation18_spill]]  ;;  %s1831_s17 = sld [smem:[#allocation19_spill]] }
 0x47e   : > { %p1833_p0 = scmp.ge.s32.totalorder %s1403_s30, 2 }
 0x483   : > { %s721_s15 = sand.u32 1, %s1830_s11   ;;  %p1832_p4 = scmp.ne.s32.totalorder %s1831_s17, 0 }
 0x484   : > { %s722_s25 = scalar_lea.sflag [#allocation4], %s721_s15 }
 0x485   : > { %p1125_p9 = pnand %p1833_p0, %p1832_p4 }
 0x487   : > { %1382 = dma.done.wait (!%p1125_p9), %s722_s25, 128  }
 0x488   : > { %1384 = vsyncadd (!%p1125_p9), %s722_s25, 4294967168  ;;  %s731_s9 = scalar_lea.sflag [#allocation12], %s721_s15 }
 0x489   : > { %1386 = dma.done.wait (!%p1125_p9), %s731_s9, 128  }
 0x48a   : > { %1388 = vsyncadd (!%p1125_p9), %s731_s9, 4294967168  ;;  %p27_p5 = scmp.ge.s32.totalorder %s1601_s26, 4   ;;  %s1834_s27 = smov %s1395_s28 }
 0x48b   : > { %s1835_s28 = smov %s1399_s29  ;;  %s1836_s29 = smov %s1611_s22 }
 0x48c   : > { %s1837_s30 = smov %s1601_s26  ;;  %29 = sbr.rel (!%p27_p5) target bundleno = 9 (0x9), region = 122 }
 0x493   :  { %736 = vsyncpa [#allocation3], 1 }
 0x494   :  { %738 = vsyncpa [#allocation3 + $0x1], 1 }
 0x495   :  { %739 = vsyncpa [#allocation6], 1 }
 0x496   :  { %740 = vsyncpa [#allocation9], 1 }
 0x497   :  { %741 = vsyncpa [#allocation4], 1 }
 0x498   :  { %743 = vsyncpa [#allocation4 + $0x1], 1 }
 0x499   :  { %744 = vsyncpa [#allocation12], 1 }
 0x49a   :  { %746 = vsyncpa [#allocation12 + $0x1], 1 }

</bundles_post_ra>
